<compile_context>
chip_gen: v7x
topology: tpu7x:2x2x1
jax: 0.10.0
libtpu: 0.0.40
codegen_flags: <defaults>
</compile_context>

<pallas_src>
import jax
import jax.numpy as jnp
from jax import lax
from jax.experimental import pallas as pl
from jax.experimental.pallas import tpu as pltpu


# ----------------------------- Pallas kernel --------------------------------
def _word_encoder_kernel(suf_ref, pre_ref, xproj_ref, whh_ref, bias_ref,
                         out_ref, gx_ref):
    """Fused char-LSTM word encoder.

    suf_ref  : (T, Bb)  int32 suffix char ids (time-major)  -> backward_lstm
    pre_ref  : (T, Bb)  int32 prefix char ids (time-major)  -> forward_lstm
    xproj_ref: (2C, 8H) block-diag (emb @ W_ih^T) table, interleaved gates
    whh_ref  : (2H, 8H) block-diag W_hh^T, interleaved gates
    bias_ref : (1, 8H)  combined bias (b_ih + b_hh), interleaved gates
    out_ref  : (Bb, 2H) final hidden states = [suffix_last | prefix_last]
    gx_ref   : (T, Bb, 8H) VMEM scratch holding the hoisted input projection
    """
    T, Bb = suf_ref.shape
    C2, G = xproj_ref.shape          # 2*num_chars, 8*H
    H2 = whh_ref.shape[0]            # 2*H
    H = H2 // 2
    C = C2 // 2

    # ---- Hoisted "embedding gather + x @ W_ih + bias" as ONE MXU matmul ----
    suf = suf_ref[...]               # (T, Bb) int32
    pre = pre_ref[...]               # (T, Bb) int32
    lane = lax.broadcasted_iota(jnp.int32, (T, Bb, C2), 2)
    # Two-hot rows: a 1 at the suffix char id and a 1 at (prefix char id + C).
    # The (2C, 8H) table is block-diagonal, so the two contributions land in
    # disjoint gate columns (suffix LSTM vs prefix LSTM).
    twohot = ((lane == suf[:, :, None]).astype(jnp.float32)
              + (lane == (pre[:, :, None] + C)).astype(jnp.float32))
    gates_x = jnp.dot(twohot.reshape(T * Bb, C2), xproj_ref[...],
                      preferred_element_type=jnp.float32) + bias_ref[...]
    gx_ref[...] = gates_x.reshape(T, Bb, G)

    whh = whh_ref[...]               # (2H, 8H)

    # ---- Recurrence: only h @ W_hh + elementwise on the critical path ------
    def step(t, carry):
        h, c = carry                                             # (Bb, 2H) f32
        gates = gx_ref[t] + jnp.dot(h, whh,
                                    preferred_element_type=jnp.float32)  # (Bb, 8H)
        act_if = jax.nn.sigmoid(gates[:, : 4 * H])   # [i_s,i_p,f_s,f_p] = 1 vreg
        i = act_if[:, : 2 * H]
        f = act_if[:, 2 * H:]
        g = jnp.tanh(gates[:, 4 * H: 6 * H])         # [g_s, g_p]
        o = jax.nn.sigmoid(gates[:, 6 * H:])         # [o_s, o_p]
        c_new = f * c + i * g
        h_new = o * jnp.tanh(c_new)
        return (h_new, c_new)

    h0 = jnp.zeros((Bb, H2), jnp.float32)
    c0 = jnp.zeros((Bb, H2), jnp.float32)
    h_last, _ = lax.fori_loop(0, T, step, (h0, c0), unroll=True)

    # Combined hidden layout is [h_suffix | h_prefix] == torch.cat(
    #   (suffix_repr[:, -1, :], prefix_repr[:, -1, :]), dim=1).
    out_ref[...] = h_last


def _word_encoder_pallas(suf_tm, pre_tm, xproj, whh, bias):
    """Launch the fused kernel.  suf_tm/pre_tm are (T, B) int32 (time-major)."""
    T, B = suf_tm.shape
    C2, G = xproj.shape
    H2 = whh.shape[0]

    # Batch tile: for real workloads with many words, grid over word blocks.
    Bb = B if B <= 256 else 256
    nb = pl.cdiv(B, Bb)

    return pl.pallas_call(
        _word_encoder_kernel,
        out_shape=jax.ShapeDtypeStruct((B, H2), jnp.float32),
        grid=(nb,),
        in_specs=[
            pl.BlockSpec((T, Bb), lambda i: (0, i)),      # suffix ids
            pl.BlockSpec((T, Bb), lambda i: (0, i)),      # prefix ids
            pl.BlockSpec((C2, G), lambda i: (0, 0)),      # gather+input-proj table
            pl.BlockSpec((H2, G), lambda i: (0, 0)),      # recurrent weights
            pl.BlockSpec((1, G), lambda i: (0, 0)),       # bias
        ],
        out_specs=pl.BlockSpec((Bb, H2), lambda i: (i, 0)),
        scratch_shapes=[pltpu.VMEM((T, Bb, G), jnp.float32)],
        compiler_params=pltpu.CompilerParams(
            dimension_semantics=("parallel",),
        ),
    )(suf_tm, pre_tm, xproj, whh, bias)


# ------------------------------ Parameters ----------------------------------
def init_word_encoder_params(key, num_chars, emb_dim, hidden_dim):
    """Deterministic synthetic params mirroring the PyTorch module shapes."""
    ks = jax.random.split(key, 9)
    bound = 1.0 / jnp.sqrt(hidden_dim)

    def unif(k, shape):
        return jax.random.uniform(k, shape, jnp.float32, -bound, bound)

    return {
        # nn.Embedding(num_chars, emb_dim)
        "embedding": jax.random.normal(ks[0], (num_chars, emb_dim), jnp.float32),
        # forward_lstm (processes prefixes)
        "fwd": {
            "w_ih": unif(ks[1], (4 * hidden_dim, emb_dim)),
            "w_hh": unif(ks[2], (4 * hidden_dim, hidden_dim)),
            "b_ih": unif(ks[3], (4 * hidden_dim,)),
            "b_hh": unif(ks[4], (4 * hidden_dim,)),
        },
        # backward_lstm (processes suffixes)
        "bwd": {
            "w_ih": unif(ks[5], (4 * hidden_dim, emb_dim)),
            "w_hh": unif(ks[6], (4 * hidden_dim, hidden_dim)),
            "b_ih": unif(ks[7], (4 * hidden_dim,)),
            "b_hh": unif(ks[8], (4 * hidden_dim,)),
        },
    }


def pack_word_encoder_params(params):
    """One-time packing: fuse embedding into the input projection and build the
    block-diagonal / gate-interleaved weight layout consumed by the kernel."""
    H = params["fwd"]["w_hh"].shape[1]
    emb = params["embedding"]                            # (C, E)
    s, p = params["bwd"], params["fwd"]                  # suffix-LSTM, prefix-LSTM

    def interleave(s_cols, p_cols):
        # (..., 4H) x (..., 4H) -> (..., 8H) laid out [i_s,i_p,f_s,f_p,g_s,g_p,o_s,o_p]
        s4 = s_cols.reshape(s_cols.shape[:-1] + (4, H))
        p4 = p_cols.reshape(p_cols.shape[:-1] + (4, H))
        return jnp.concatenate([s4, p4], axis=-1).reshape(s_cols.shape[:-1] + (8 * H,))

    # Embedding fused with W_ih:  (emb @ W_ih^T)[char_id] == emb[char_id] @ W_ih^T
    xproj_s = emb @ s["w_ih"].T                          # (C, 4H)
    xproj_p = emb @ p["w_ih"].T                          # (C, 4H)
    zc = jnp.zeros_like(xproj_s)
    xproj = jnp.concatenate(
        [interleave(xproj_s, zc), interleave(zc, xproj_p)], axis=0)     # (2C, 8H)

    whh_s = s["w_hh"].T                                  # (H, 4H)
    whh_p = p["w_hh"].T
    zh = jnp.zeros_like(whh_s)
    whh = jnp.concatenate(
        [interleave(whh_s, zh), interleave(zh, whh_p)], axis=0)         # (2H, 8H)

    bias = interleave((s["b_ih"] + s["b_hh"])[None, :],
                      (p["b_ih"] + p["b_hh"])[None, :])                 # (1, 8H)

    return {"xproj": xproj, "whh": whh, "bias": bias}


# ------------------------------ Forward pass ---------------------------------
@jax.jit
def word_encoder_forward(packed, prefixes, suffixes):
    """prefixes, suffixes: int32 (B, T) char indices -> (B, 2H) word repr.

    Dropout layers are identity at inference; embedding lookup, both LSTMs and
    the final concat all execute inside one fused Pallas kernel.
    """
    suf_tm = jnp.transpose(suffixes).astype(jnp.int32)   # (T, B)
    pre_tm = jnp.transpose(prefixes).astype(jnp.int32)   # (T, B)
    return _word_encoder_pallas(suf_tm, pre_tm,
                                packed["xproj"], packed["whh"], packed["bias"])


# ------------------------------ Reference check -------------------------------
def _lstm_last_hidden_ref(x_bte, w_ih, w_hh, b_ih, b_hh):
    """Pure-JAX reference matching torch.nn.LSTM (batch_first) last hidden."""
    B, T, E = x_bte.shape
    H = w_hh.shape[1]

    def step(carry, x_t):
        h, c = carry
        gates = x_t @ w_ih.T + h @ w_hh.T + b_ih + b_hh
        i = jax.nn.sigmoid(gates[:, 0 * H:1 * H])
        f = jax.nn.sigmoid(gates[:, 1 * H:2 * H])
        g = jnp.tanh(gates[:, 2 * H:3 * H])
        o = jax.nn.sigmoid(gates[:, 3 * H:4 * H])
        c = f * c + i * g
        h = o * jnp.tanh(c)
        return (h, c), None

    h0 = jnp.zeros((B, H), jnp.float32)
    c0 = jnp.zeros((B, H), jnp.float32)
    (h, _), _ = lax.scan(step, (h0, c0), jnp.transpose(x_bte, (1, 0, 2)))
    return h


if __name__ == "__main__":
    # config: num_chars=64, embeddings_dim=32, word_encoder_hidden_dim=32, dropout=0.1
    NUM_CHARS, EMB, HID = 64, 32, 32
    B, T = 8, 8  # 8 words, 8 chars per prefix/suffix

    key = jax.random.PRNGKey(0)
    k_param, k_pre, k_suf = jax.random.split(key, 3)

    params = init_word_encoder_params(k_param, NUM_CHARS, EMB, HID)
    packed = pack_word_encoder_params(params)
    prefixes = jax.random.randint(k_pre, (B, T), 0, NUM_CHARS, dtype=jnp.int32)
    suffixes = jax.random.randint(k_suf, (B, T), 0, NUM_CHARS, dtype=jnp.int32)

    out = word_encoder_forward(packed, prefixes, suffixes)
    out = jax.block_until_ready(out)
    assert out.shape == (B, 2 * HID), out.shape

    # Cross-check the fused Pallas kernel against a pure-JAX reference.
    emb = params["embedding"]
    pre_e = jnp.take(emb, prefixes, axis=0)
    suf_e = jnp.take(emb, suffixes, axis=0)
    ref_pre = _lstm_last_hidden_ref(
        pre_e, params["fwd"]["w_ih"], params["fwd"]["w_hh"],
        params["fwd"]["b_ih"], params["fwd"]["b_hh"])
    ref_suf = _lstm_last_hidden_ref(
        suf_e, params["bwd"]["w_ih"], params["bwd"]["w_hh"],
        params["bwd"]["b_ih"], params["bwd"]["b_hh"])
    ref = jnp.concatenate([ref_suf, ref_pre], axis=1)

    assert jnp.allclose(out, ref, atol=1e-4, rtol=1e-4), (
        float(jnp.max(jnp.abs(out - ref))))

    print("KERNEL_OK")
</pallas_src>

<mosaic_0001>
module attributes {stable_mosaic.version = 11 : i64} {
  func.func @_word_encoder_kernel(%arg0: i32, %arg1: memref<8x8xi32, #tpu.memory_space<vmem>>, %arg2: memref<8x8xi32, #tpu.memory_space<vmem>>, %arg3: memref<128x256xf32, #tpu.memory_space<vmem>>, %arg4: memref<64x256xf32, #tpu.memory_space<vmem>>, %arg5: memref<1x256xf32, #tpu.memory_space<vmem>>, %arg6: memref<8x64xf32, #tpu.memory_space<vmem>>, %arg7: memref<8x8x256xf32, #tpu.memory_space<vmem>>) attributes {dimension_semantics = [#tpu.dimension_semantics<parallel>], iteration_bounds = array<i64: 1>, scalar_prefetch = 0 : i64, scratch_operands = 1 : i64, tpu.core_type = #tpu.core_type<tc>, window_params = [{transform_indices = @transform_0, window_bounds = array<i64: 8, 8>}, {transform_indices = @transform_1, window_bounds = array<i64: 8, 8>}, {pipeline_mode = #tpu.pipeline_mode<synchronous>, transform_indices = @transform_2, window_bounds = array<i64: 128, 256>}, {pipeline_mode = #tpu.pipeline_mode<synchronous>, transform_indices = @transform_3, window_bounds = array<i64: 64, 256>}, {pipeline_mode = #tpu.pipeline_mode<synchronous>, transform_indices = @transform_4, window_bounds = array<i64: 1, 256>}, {transform_indices = @transform_5, window_bounds = array<i64: 8, 64>}]} {
    %c0 = arith.constant 0 : index
    %c0_0 = arith.constant 0 : index
    %0 = vector.load %arg1[%c0, %c0_0] : memref<8x8xi32, #tpu.memory_space<vmem>>, vector<8x8xi32>
    %c0_1 = arith.constant 0 : index
    %c0_2 = arith.constant 0 : index
    %1 = vector.load %arg2[%c0_1, %c0_2] : memref<8x8xi32, #tpu.memory_space<vmem>>, vector<8x8xi32>
    %2 = tpu.iota {dimensions = array<i32: 2>} : vector<8x8x128xi32>
    %3 = vector.shape_cast %0 : vector<8x8xi32> to vector<8x8x1xi32>
    %4 = vector.broadcast %3 : vector<8x8x1xi32> to vector<8x8x128xi32>
    %5 = arith.cmpi eq, %2, %4 : vector<8x8x128xi32>
    %6 = arith.extui %5 : vector<8x8x128xi1> to vector<8x8x128xi32>
    %7 = arith.sitofp %6 : vector<8x8x128xi32> to vector<8x8x128xf32>
    %8 = vector.shape_cast %1 : vector<8x8xi32> to vector<8x8x1xi32>
    %c64_i32 = arith.constant 64 : i32
    %9 = vector.broadcast %c64_i32 : i32 to vector<8x8x1xi32>
    %10 = arith.addi %8, %9 : vector<8x8x1xi32>
    %11 = vector.broadcast %10 : vector<8x8x1xi32> to vector<8x8x128xi32>
    %12 = arith.cmpi eq, %2, %11 : vector<8x8x128xi32>
    %13 = arith.extui %12 : vector<8x8x128xi1> to vector<8x8x128xi32>
    %14 = arith.sitofp %13 : vector<8x8x128xi32> to vector<8x8x128xf32>
    %15 = arith.addf %7, %14 : vector<8x8x128xf32>
    %16 = vector.shape_cast %15 : vector<8x8x128xf32> to vector<64x128xf32>
    %c0_3 = arith.constant 0 : index
    %c0_4 = arith.constant 0 : index
    %17 = vector.load %arg3[%c0_3, %c0_4] : memref<128x256xf32, #tpu.memory_space<vmem>>, vector<128x256xf32>
    %cst = arith.constant dense<0.000000e+00> : vector<64x256xf32>
    %18 = tpu.matmul %16, %17, %cst {dimension_numbers = #tpu.dot_dimension_numbers<[1], [0], [0], [1], [0, 0, 1, 1], [], []>} : vector<64x128xf32>, vector<128x256xf32>, vector<64x256xf32> -> vector<64x256xf32>
    %c0_5 = arith.constant 0 : index
    %c0_6 = arith.constant 0 : index
    %19 = vector.load %arg5[%c0_5, %c0_6] : memref<1x256xf32, #tpu.memory_space<vmem>>, vector<1x256xf32>
    %20 = vector.broadcast %19 : vector<1x256xf32> to vector<64x256xf32>
    %21 = arith.addf %18, %20 : vector<64x256xf32>
    %22 = vector.shape_cast %21 : vector<64x256xf32> to vector<8x8x256xf32>
    %c0_7 = arith.constant 0 : index
    %c0_8 = arith.constant 0 : index
    %c0_9 = arith.constant 0 : index
    %23 = vector.load %arg7[%c0_7, %c0_8, %c0_9] : memref<8x8x256xf32, #tpu.memory_space<vmem>>, vector<8x8x256xf32>
    tpu.vector_store %arg7[%c0_7, %c0_8, %c0_9], %22 {strides = array<i32>} : memref<8x8x256xf32, #tpu.memory_space<vmem>>, vector<8x8x256xf32>,
    %c0_10 = arith.constant 0 : index
    %c0_11 = arith.constant 0 : index
    %24 = vector.load %arg4[%c0_10, %c0_11] : memref<64x256xf32, #tpu.memory_space<vmem>>, vector<64x256xf32>
    %cst_12 = arith.constant 0.000000e+00 : f32
    %25 = vector.broadcast %cst_12 : f32 to vector<8x64xf32>
    %cst_13 = arith.constant 0.000000e+00 : f32
    %26 = vector.broadcast %cst_13 : f32 to vector<8x64xf32>
    %c0_i32 = arith.constant 0 : i32
    %27 = arith.index_cast %c0_i32 : i32 to index
    %c0_14 = arith.constant 0 : index
    %c0_15 = arith.constant 0 : index
    %28 = vector.load %arg7[%27, %c0_14, %c0_15] : memref<8x8x256xf32, #tpu.memory_space<vmem>>, vector<1x8x256xf32>
    %29 = vector.shape_cast %28 : vector<1x8x256xf32> to vector<8x256xf32>
    %cst_16 = arith.constant dense<0.000000e+00> : vector<8x256xf32>
    %30 = tpu.matmul %25, %24, %cst_16 {dimension_numbers = #tpu.dot_dimension_numbers<[1], [0], [0], [1], [0, 0, 1, 1], [], []>} : vector<8x64xf32>, vector<64x256xf32>, vector<8x256xf32> -> vector<8x256xf32>
    %31 = arith.addf %29, %30 : vector<8x256xf32>
    %32 = vector.extract_strided_slice %31 {offsets = [0, 0], sizes = [8, 128], strides = [1, 1]} : vector<8x256xf32> to vector<8x128xf32>
    %33 = arith.negf %32 : vector<8x128xf32>
    %34 = math.exp %33 : vector<8x128xf32>
    %cst_17 = arith.constant 1.000000e+00 : f32
    %35 = vector.broadcast %cst_17 : f32 to vector<8x128xf32>
    %36 = arith.addf %35, %34 : vector<8x128xf32>
    %37 = arith.divf %35, %36 : vector<8x128xf32>
    %38 = vector.extract_strided_slice %37 {offsets = [0, 0], sizes = [8, 64], strides = [1, 1]} : vector<8x128xf32> to vector<8x64xf32>
    %39 = vector.extract_strided_slice %37 {offsets = [0, 64], sizes = [8, 64], strides = [1, 1]} : vector<8x128xf32> to vector<8x64xf32>
    %40 = vector.extract_strided_slice %31 {offsets = [0, 128], sizes = [8, 64], strides = [1, 1]} : vector<8x256xf32> to vector<8x64xf32>
    %41 = math.tanh %40 : vector<8x64xf32>
    %42 = vector.extract_strided_slice %31 {offsets = [0, 192], sizes = [8, 64], strides = [1, 1]} : vector<8x256xf32> to vector<8x64xf32>
    %43 = arith.negf %42 : vector<8x64xf32>
    %44 = math.exp %43 : vector<8x64xf32>
    %cst_18 = arith.constant 1.000000e+00 : f32
    %45 = vector.broadcast %cst_18 : f32 to vector<8x64xf32>
    %46 = arith.addf %45, %44 : vector<8x64xf32>
    %47 = arith.divf %45, %46 : vector<8x64xf32>
    %48 = arith.mulf %39, %26 : vector<8x64xf32>
    %49 = arith.mulf %38, %41 : vector<8x64xf32>
    %50 = arith.addf %48, %49 : vector<8x64xf32>
    %51 = math.tanh %50 : vector<8x64xf32>
    %52 = arith.mulf %47, %51 : vector<8x64xf32>
    %c1_i32 = arith.constant 1 : i32
    %53 = arith.index_cast %c1_i32 : i32 to index
    %c0_19 = arith.constant 0 : index
    %c0_20 = arith.constant 0 : index
    %54 = vector.load %arg7[%53, %c0_19, %c0_20] : memref<8x8x256xf32, #tpu.memory_space<vmem>>, vector<1x8x256xf32>
    %55 = vector.shape_cast %54 : vector<1x8x256xf32> to vector<8x256xf32>
    %cst_21 = arith.constant dense<0.000000e+00> : vector<8x256xf32>
    %56 = tpu.matmul %52, %24, %cst_21 {dimension_numbers = #tpu.dot_dimension_numbers<[1], [0], [0], [1], [0, 0, 1, 1], [], []>} : vector<8x64xf32>, vector<64x256xf32>, vector<8x256xf32> -> vector<8x256xf32>
    %57 = arith.addf %55, %56 : vector<8x256xf32>
    %58 = vector.extract_strided_slice %57 {offsets = [0, 0], sizes = [8, 128], strides = [1, 1]} : vector<8x256xf32> to vector<8x128xf32>
    %59 = arith.negf %58 : vector<8x128xf32>
    %60 = math.exp %59 : vector<8x128xf32>
    %cst_22 = arith.constant 1.000000e+00 : f32
    %61 = vector.broadcast %cst_22 : f32 to vector<8x128xf32>
    %62 = arith.addf %61, %60 : vector<8x128xf32>
    %63 = arith.divf %61, %62 : vector<8x128xf32>
    %64 = vector.extract_strided_slice %63 {offsets = [0, 0], sizes = [8, 64], strides = [1, 1]} : vector<8x128xf32> to vector<8x64xf32>
    %65 = vector.extract_strided_slice %63 {offsets = [0, 64], sizes = [8, 64], strides = [1, 1]} : vector<8x128xf32> to vector<8x64xf32>
    %66 = vector.extract_strided_slice %57 {offsets = [0, 128], sizes = [8, 64], strides = [1, 1]} : vector<8x256xf32> to vector<8x64xf32>
    %67 = math.tanh %66 : vector<8x64xf32>
    %68 = vector.extract_strided_slice %57 {offsets = [0, 192], sizes = [8, 64], strides = [1, 1]} : vector<8x256xf32> to vector<8x64xf32>
    %69 = arith.negf %68 : vector<8x64xf32>
    %70 = math.exp %69 : vector<8x64xf32>
    %cst_23 = arith.constant 1.000000e+00 : f32
    %71 = vector.broadcast %cst_23 : f32 to vector<8x64xf32>
    %72 = arith.addf %71, %70 : vector<8x64xf32>
    %73 = arith.divf %71, %72 : vector<8x64xf32>
    %74 = arith.mulf %65, %50 : vector<8x64xf32>
    %75 = arith.mulf %64, %67 : vector<8x64xf32>
    %76 = arith.addf %74, %75 : vector<8x64xf32>
    %77 = math.tanh %76 : vector<8x64xf32>
    %78 = arith.mulf %73, %77 : vector<8x64xf32>
    %c2_i32 = arith.constant 2 : i32
    %79 = arith.index_cast %c2_i32 : i32 to index
    %c0_24 = arith.constant 0 : index
    %c0_25 = arith.constant 0 : index
    %80 = vector.load %arg7[%79, %c0_24, %c0_25] : memref<8x8x256xf32, #tpu.memory_space<vmem>>, vector<1x8x256xf32>
    %81 = vector.shape_cast %80 : vector<1x8x256xf32> to vector<8x256xf32>
    %cst_26 = arith.constant dense<0.000000e+00> : vector<8x256xf32>
    %82 = tpu.matmul %78, %24, %cst_26 {dimension_numbers = #tpu.dot_dimension_numbers<[1], [0], [0], [1], [0, 0, 1, 1], [], []>} : vector<8x64xf32>, vector<64x256xf32>, vector<8x256xf32> -> vector<8x256xf32>
    %83 = arith.addf %81, %82 : vector<8x256xf32>
    %84 = vector.extract_strided_slice %83 {offsets = [0, 0], sizes = [8, 128], strides = [1, 1]} : vector<8x256xf32> to vector<8x128xf32>
    %85 = arith.negf %84 : vector<8x128xf32>
    %86 = math.exp %85 : vector<8x128xf32>
    %cst_27 = arith.constant 1.000000e+00 : f32
    %87 = vector.broadcast %cst_27 : f32 to vector<8x128xf32>
    %88 = arith.addf %87, %86 : vector<8x128xf32>
    %89 = arith.divf %87, %88 : vector<8x128xf32>
    %90 = vector.extract_strided_slice %89 {offsets = [0, 0], sizes = [8, 64], strides = [1, 1]} : vector<8x128xf32> to vector<8x64xf32>
    %91 = vector.extract_strided_slice %89 {offsets = [0, 64], sizes = [8, 64], strides = [1, 1]} : vector<8x128xf32> to vector<8x64xf32>
    %92 = vector.extract_strided_slice %83 {offsets = [0, 128], sizes = [8, 64], strides = [1, 1]} : vector<8x256xf32> to vector<8x64xf32>
    %93 = math.tanh %92 : vector<8x64xf32>
    %94 = vector.extract_strided_slice %83 {offsets = [0, 192], sizes = [8, 64], strides = [1, 1]} : vector<8x256xf32> to vector<8x64xf32>
    %95 = arith.negf %94 : vector<8x64xf32>
    %96 = math.exp %95 : vector<8x64xf32>
    %cst_28 = arith.constant 1.000000e+00 : f32
    %97 = vector.broadcast %cst_28 : f32 to vector<8x64xf32>
    %98 = arith.addf %97, %96 : vector<8x64xf32>
    %99 = arith.divf %97, %98 : vector<8x64xf32>
    %100 = arith.mulf %91, %76 : vector<8x64xf32>
    %101 = arith.mulf %90, %93 : vector<8x64xf32>
    %102 = arith.addf %100, %101 : vector<8x64xf32>
    %103 = math.tanh %102 : vector<8x64xf32>
    %104 = arith.mulf %99, %103 : vector<8x64xf32>
    %c3_i32 = arith.constant 3 : i32
    %105 = arith.index_cast %c3_i32 : i32 to index
    %c0_29 = arith.constant 0 : index
    %c0_30 = arith.constant 0 : index
    %106 = vector.load %arg7[%105, %c0_29, %c0_30] : memref<8x8x256xf32, #tpu.memory_space<vmem>>, vector<1x8x256xf32>
    %107 = vector.shape_cast %106 : vector<1x8x256xf32> to vector<8x256xf32>
    %cst_31 = arith.constant dense<0.000000e+00> : vector<8x256xf32>
    %108 = tpu.matmul %104, %24, %cst_31 {dimension_numbers = #tpu.dot_dimension_numbers<[1], [0], [0], [1], [0, 0, 1, 1], [], []>} : vector<8x64xf32>, vector<64x256xf32>, vector<8x256xf32> -> vector<8x256xf32>
    %109 = arith.addf %107, %108 : vector<8x256xf32>
    %110 = vector.extract_strided_slice %109 {offsets = [0, 0], sizes = [8, 128], strides = [1, 1]} : vector<8x256xf32> to vector<8x128xf32>
    %111 = arith.negf %110 : vector<8x128xf32>
    %112 = math.exp %111 : vector<8x128xf32>
    %cst_32 = arith.constant 1.000000e+00 : f32
    %113 = vector.broadcast %cst_32 : f32 to vector<8x128xf32>
    %114 = arith.addf %113, %112 : vector<8x128xf32>
    %115 = arith.divf %113, %114 : vector<8x128xf32>
    %116 = vector.extract_strided_slice %115 {offsets = [0, 0], sizes = [8, 64], strides = [1, 1]} : vector<8x128xf32> to vector<8x64xf32>
    %117 = vector.extract_strided_slice %115 {offsets = [0, 64], sizes = [8, 64], strides = [1, 1]} : vector<8x128xf32> to vector<8x64xf32>
    %118 = vector.extract_strided_slice %109 {offsets = [0, 128], sizes = [8, 64], strides = [1, 1]} : vector<8x256xf32> to vector<8x64xf32>
    %119 = math.tanh %118 : vector<8x64xf32>
    %120 = vector.extract_strided_slice %109 {offsets = [0, 192], sizes = [8, 64], strides = [1, 1]} : vector<8x256xf32> to vector<8x64xf32>
    %121 = arith.negf %120 : vector<8x64xf32>
    %122 = math.exp %121 : vector<8x64xf32>
    %cst_33 = arith.constant 1.000000e+00 : f32
    %123 = vector.broadcast %cst_33 : f32 to vector<8x64xf32>
    %124 = arith.addf %123, %122 : vector<8x64xf32>
    %125 = arith.divf %123, %124 : vector<8x64xf32>
    %126 = arith.mulf %117, %102 : vector<8x64xf32>
    %127 = arith.mulf %116, %119 : vector<8x64xf32>
    %128 = arith.addf %126, %127 : vector<8x64xf32>
    %129 = math.tanh %128 : vector<8x64xf32>
    %130 = arith.mulf %125, %129 : vector<8x64xf32>
    %c4_i32 = arith.constant 4 : i32
    %131 = arith.index_cast %c4_i32 : i32 to index
    %c0_34 = arith.constant 0 : index
    %c0_35 = arith.constant 0 : index
    %132 = vector.load %arg7[%131, %c0_34, %c0_35] : memref<8x8x256xf32, #tpu.memory_space<vmem>>, vector<1x8x256xf32>
    %133 = vector.shape_cast %132 : vector<1x8x256xf32> to vector<8x256xf32>
    %cst_36 = arith.constant dense<0.000000e+00> : vector<8x256xf32>
    %134 = tpu.matmul %130, %24, %cst_36 {dimension_numbers = #tpu.dot_dimension_numbers<[1], [0], [0], [1], [0, 0, 1, 1], [], []>} : vector<8x64xf32>, vector<64x256xf32>, vector<8x256xf32> -> vector<8x256xf32>
    %135 = arith.addf %133, %134 : vector<8x256xf32>
    %136 = vector.extract_strided_slice %135 {offsets = [0, 0], sizes = [8, 128], strides = [1, 1]} : vector<8x256xf32> to vector<8x128xf32>
    %137 = arith.negf %136 : vector<8x128xf32>
    %138 = math.exp %137 : vector<8x128xf32>
    %cst_37 = arith.constant 1.000000e+00 : f32
    %139 = vector.broadcast %cst_37 : f32 to vector<8x128xf32>
    %140 = arith.addf %139, %138 : vector<8x128xf32>
    %141 = arith.divf %139, %140 : vector<8x128xf32>
    %142 = vector.extract_strided_slice %141 {offsets = [0, 0], sizes = [8, 64], strides = [1, 1]} : vector<8x128xf32> to vector<8x64xf32>
    %143 = vector.extract_strided_slice %141 {offsets = [0, 64], sizes = [8, 64], strides = [1, 1]} : vector<8x128xf32> to vector<8x64xf32>
    %144 = vector.extract_strided_slice %135 {offsets = [0, 128], sizes = [8, 64], strides = [1, 1]} : vector<8x256xf32> to vector<8x64xf32>
    %145 = math.tanh %144 : vector<8x64xf32>
    %146 = vector.extract_strided_slice %135 {offsets = [0, 192], sizes = [8, 64], strides = [1, 1]} : vector<8x256xf32> to vector<8x64xf32>
    %147 = arith.negf %146 : vector<8x64xf32>
    %148 = math.exp %147 : vector<8x64xf32>
    %cst_38 = arith.constant 1.000000e+00 : f32
    %149 = vector.broadcast %cst_38 : f32 to vector<8x64xf32>
    %150 = arith.addf %149, %148 : vector<8x64xf32>
    %151 = arith.divf %149, %150 : vector<8x64xf32>
    %152 = arith.mulf %143, %128 : vector<8x64xf32>
    %153 = arith.mulf %142, %145 : vector<8x64xf32>
    %154 = arith.addf %152, %153 : vector<8x64xf32>
    %155 = math.tanh %154 : vector<8x64xf32>
    %156 = arith.mulf %151, %155 : vector<8x64xf32>
    %c5_i32 = arith.constant 5 : i32
    %157 = arith.index_cast %c5_i32 : i32 to index
    %c0_39 = arith.constant 0 : index
    %c0_40 = arith.constant 0 : index
    %158 = vector.load %arg7[%157, %c0_39, %c0_40] : memref<8x8x256xf32, #tpu.memory_space<vmem>>, vector<1x8x256xf32>
    %159 = vector.shape_cast %158 : vector<1x8x256xf32> to vector<8x256xf32>
    %cst_41 = arith.constant dense<0.000000e+00> : vector<8x256xf32>
    %160 = tpu.matmul %156, %24, %cst_41 {dimension_numbers = #tpu.dot_dimension_numbers<[1], [0], [0], [1], [0, 0, 1, 1], [], []>} : vector<8x64xf32>, vector<64x256xf32>, vector<8x256xf32> -> vector<8x256xf32>
    %161 = arith.addf %159, %160 : vector<8x256xf32>
    %162 = vector.extract_strided_slice %161 {offsets = [0, 0], sizes = [8, 128], strides = [1, 1]} : vector<8x256xf32> to vector<8x128xf32>
    %163 = arith.negf %162 : vector<8x128xf32>
    %164 = math.exp %163 : vector<8x128xf32>
    %cst_42 = arith.constant 1.000000e+00 : f32
    %165 = vector.broadcast %cst_42 : f32 to vector<8x128xf32>
    %166 = arith.addf %165, %164 : vector<8x128xf32>
    %167 = arith.divf %165, %166 : vector<8x128xf32>
    %168 = vector.extract_strided_slice %167 {offsets = [0, 0], sizes = [8, 64], strides = [1, 1]} : vector<8x128xf32> to vector<8x64xf32>
    %169 = vector.extract_strided_slice %167 {offsets = [0, 64], sizes = [8, 64], strides = [1, 1]} : vector<8x128xf32> to vector<8x64xf32>
    %170 = vector.extract_strided_slice %161 {offsets = [0, 128], sizes = [8, 64], strides = [1, 1]} : vector<8x256xf32> to vector<8x64xf32>
    %171 = math.tanh %170 : vector<8x64xf32>
    %172 = vector.extract_strided_slice %161 {offsets = [0, 192], sizes = [8, 64], strides = [1, 1]} : vector<8x256xf32> to vector<8x64xf32>
    %173 = arith.negf %172 : vector<8x64xf32>
    %174 = math.exp %173 : vector<8x64xf32>
    %cst_43 = arith.constant 1.000000e+00 : f32
    %175 = vector.broadcast %cst_43 : f32 to vector<8x64xf32>
    %176 = arith.addf %175, %174 : vector<8x64xf32>
    %177 = arith.divf %175, %176 : vector<8x64xf32>
    %178 = arith.mulf %169, %154 : vector<8x64xf32>
    %179 = arith.mulf %168, %171 : vector<8x64xf32>
    %180 = arith.addf %178, %179 : vector<8x64xf32>
    %181 = math.tanh %180 : vector<8x64xf32>
    %182 = arith.mulf %177, %181 : vector<8x64xf32>
    %c6_i32 = arith.constant 6 : i32
    %183 = arith.index_cast %c6_i32 : i32 to index
    %c0_44 = arith.constant 0 : index
    %c0_45 = arith.constant 0 : index
    %184 = vector.load %arg7[%183, %c0_44, %c0_45] : memref<8x8x256xf32, #tpu.memory_space<vmem>>, vector<1x8x256xf32>
    %185 = vector.shape_cast %184 : vector<1x8x256xf32> to vector<8x256xf32>
    %cst_46 = arith.constant dense<0.000000e+00> : vector<8x256xf32>
    %186 = tpu.matmul %182, %24, %cst_46 {dimension_numbers = #tpu.dot_dimension_numbers<[1], [0], [0], [1], [0, 0, 1, 1], [], []>} : vector<8x64xf32>, vector<64x256xf32>, vector<8x256xf32> -> vector<8x256xf32>
    %187 = arith.addf %185, %186 : vector<8x256xf32>
    %188 = vector.extract_strided_slice %187 {offsets = [0, 0], sizes = [8, 128], strides = [1, 1]} : vector<8x256xf32> to vector<8x128xf32>
    %189 = arith.negf %188 : vector<8x128xf32>
    %190 = math.exp %189 : vector<8x128xf32>
    %cst_47 = arith.constant 1.000000e+00 : f32
    %191 = vector.broadcast %cst_47 : f32 to vector<8x128xf32>
    %192 = arith.addf %191, %190 : vector<8x128xf32>
    %193 = arith.divf %191, %192 : vector<8x128xf32>
    %194 = vector.extract_strided_slice %193 {offsets = [0, 0], sizes = [8, 64], strides = [1, 1]} : vector<8x128xf32> to vector<8x64xf32>
    %195 = vector.extract_strided_slice %193 {offsets = [0, 64], sizes = [8, 64], strides = [1, 1]} : vector<8x128xf32> to vector<8x64xf32>
    %196 = vector.extract_strided_slice %187 {offsets = [0, 128], sizes = [8, 64], strides = [1, 1]} : vector<8x256xf32> to vector<8x64xf32>
    %197 = math.tanh %196 : vector<8x64xf32>
    %198 = vector.extract_strided_slice %187 {offsets = [0, 192], sizes = [8, 64], strides = [1, 1]} : vector<8x256xf32> to vector<8x64xf32>
    %199 = arith.negf %198 : vector<8x64xf32>
    %200 = math.exp %199 : vector<8x64xf32>
    %cst_48 = arith.constant 1.000000e+00 : f32
    %201 = vector.broadcast %cst_48 : f32 to vector<8x64xf32>
    %202 = arith.addf %201, %200 : vector<8x64xf32>
    %203 = arith.divf %201, %202 : vector<8x64xf32>
    %204 = arith.mulf %195, %180 : vector<8x64xf32>
    %205 = arith.mulf %194, %197 : vector<8x64xf32>
    %206 = arith.addf %204, %205 : vector<8x64xf32>
    %207 = math.tanh %206 : vector<8x64xf32>
    %208 = arith.mulf %203, %207 : vector<8x64xf32>
    %c7_i32 = arith.constant 7 : i32
    %209 = arith.index_cast %c7_i32 : i32 to index
    %c0_49 = arith.constant 0 : index
    %c0_50 = arith.constant 0 : index
    %210 = vector.load %arg7[%209, %c0_49, %c0_50] : memref<8x8x256xf32, #tpu.memory_space<vmem>>, vector<1x8x256xf32>
    %211 = vector.shape_cast %210 : vector<1x8x256xf32> to vector<8x256xf32>
    %cst_51 = arith.constant dense<0.000000e+00> : vector<8x256xf32>
    %212 = tpu.matmul %208, %24, %cst_51 {dimension_numbers = #tpu.dot_dimension_numbers<[1], [0], [0], [1], [0, 0, 1, 1], [], []>} : vector<8x64xf32>, vector<64x256xf32>, vector<8x256xf32> -> vector<8x256xf32>
    %213 = arith.addf %211, %212 : vector<8x256xf32>
    %214 = vector.extract_strided_slice %213 {offsets = [0, 0], sizes = [8, 128], strides = [1, 1]} : vector<8x256xf32> to vector<8x128xf32>
    %215 = arith.negf %214 : vector<8x128xf32>
    %216 = math.exp %215 : vector<8x128xf32>
    %cst_52 = arith.constant 1.000000e+00 : f32
    %217 = vector.broadcast %cst_52 : f32 to vector<8x128xf32>
    %218 = arith.addf %217, %216 : vector<8x128xf32>
    %219 = arith.divf %217, %218 : vector<8x128xf32>
    %220 = vector.extract_strided_slice %219 {offsets = [0, 0], sizes = [8, 64], strides = [1, 1]} : vector<8x128xf32> to vector<8x64xf32>
    %221 = vector.extract_strided_slice %219 {offsets = [0, 64], sizes = [8, 64], strides = [1, 1]} : vector<8x128xf32> to vector<8x64xf32>
    %222 = vector.extract_strided_slice %213 {offsets = [0, 128], sizes = [8, 64], strides = [1, 1]} : vector<8x256xf32> to vector<8x64xf32>
    %223 = math.tanh %222 : vector<8x64xf32>
    %224 = vector.extract_strided_slice %213 {offsets = [0, 192], sizes = [8, 64], strides = [1, 1]} : vector<8x256xf32> to vector<8x64xf32>
    %225 = arith.negf %224 : vector<8x64xf32>
    %226 = math.exp %225 : vector<8x64xf32>
    %cst_53 = arith.constant 1.000000e+00 : f32
    %227 = vector.broadcast %cst_53 : f32 to vector<8x64xf32>
    %228 = arith.addf %227, %226 : vector<8x64xf32>
    %229 = arith.divf %227, %228 : vector<8x64xf32>
    %230 = arith.mulf %221, %206 : vector<8x64xf32>
    %231 = arith.mulf %220, %223 : vector<8x64xf32>
    %232 = arith.addf %230, %231 : vector<8x64xf32>
    %233 = math.tanh %232 : vector<8x64xf32>
    %234 = arith.mulf %229, %233 : vector<8x64xf32>
    %c8_i32 = arith.constant 8 : i32
    %c0_54 = arith.constant 0 : index
    %c0_55 = arith.constant 0 : index
    %235 = vector.load %arg6[%c0_54, %c0_55] : memref<8x64xf32, #tpu.memory_space<vmem>>, vector<8x64xf32>
    tpu.vector_store %arg6[%c0_54, %c0_55], %234 {strides = array<i32>} : memref<8x64xf32, #tpu.memory_space<vmem>>, vector<8x64xf32>,
    return
  }
  func.func @transform_0(%arg0: i32) -> (i32, i32) {
    %c0_i32 = arith.constant 0 : i32
    %c0_i32_0 = arith.constant 0 : i32
    return %c0_i32, %arg0 : i32, i32
  }
  func.func @transform_1(%arg0: i32) -> (i32, i32) {
    %c0_i32 = arith.constant 0 : i32
    %c0_i32_0 = arith.constant 0 : i32
    return %c0_i32, %arg0 : i32, i32
  }
  func.func @transform_2(%arg0: i32) -> (i32, i32) {
    %c0_i32 = arith.constant 0 : i32
    %c0_i32_0 = arith.constant 0 : i32
    %c0_i32_1 = arith.constant 0 : i32
    return %c0_i32, %c0_i32_0 : i32, i32
  }
  func.func @transform_3(%arg0: i32) -> (i32, i32) {
    %c0_i32 = arith.constant 0 : i32
    %c0_i32_0 = arith.constant 0 : i32
    %c0_i32_1 = arith.constant 0 : i32
    return %c0_i32, %c0_i32_0 : i32, i32
  }
  func.func @transform_4(%arg0: i32) -> (i32, i32) {
    %c0_i32 = arith.constant 0 : i32
    %c0_i32_0 = arith.constant 0 : i32
    %c0_i32_1 = arith.constant 0 : i32
    return %c0_i32, %c0_i32_0 : i32, i32
  }
  func.func @transform_5(%arg0: i32) -> (i32, i32) {
    %c0_i32 = arith.constant 0 : i32
    %c0_i32_0 = arith.constant 0 : i32
    return %arg0, %c0_i32 : i32, i32
  }
}

</mosaic_0001>

<bundles_post_ra>
// kernel: word_encoder_forward.1
= control target key start
LH: loop header
LB: loop body
LE: loop exit
PB: predicated region body
PF: predicated region fallthrough
CT: control target
= control target key end

     0   :  { %10 = vsyncpa [#allocation4], 0  ;;  %s2002_s0 = inlined_call_operand.vmem [shape: s32[8,8], index: 0, kind: input, shape index: {}]   ;;  %s2003_s1 = inlined_call_operand.vmem [shape: s32[8,8], index: 1, kind: input, shape index: {}]   ;;  %s2004_s2 = inlined_call_operand.hbm [shape: f32[128,256], index: 2, kind: input, shape index: {}]   ;;  %s2005_s3 = inlined_call_operand.hbm [shape: f32[64,256], index: 3, kind: input, shape index: {}]   ;;  %s2006_s4 = inlined_call_operand.vmem [shape: f32[1,256], index: 4, kind: input, shape index: {}]   ;;  %s2007_s5 = inlined_call_operand.hbm [shape: f32[8,64], index: 5, kind: output, shape index: {}]  }
   0x1   :  { %11 = vsyncpa [#allocation7], 0 }
   0x2   :  { %12 = vsyncpa [#allocation5], 0  ;;  %s1667_s18 = smov [#allocation3]   ;;  %s1595_s22 = scalar_lea.hbm %s2004_s2, 4096 }
   0x3   :  { %s22_s19 = sshll.u32 %s1667_s18, 4  ;;  %p1596_p0 = scmp.ne.s32.totalorder %s2004_s2, %s1595_s22  ;;  %s23_s19 = int_to_ptr.vmem [resolvable:$true] %s22_s19 }
   0x4   :  { %p1599_p1 = scmp.lt.u32.totalorder %s1595_s22, %s2004_s2 }
   0x6   :  { %p1601_p2 = pnand %p1599_p1, %p1596_p0 }
   0x8   :  { %1604 = shalt.err (!%p1601_p2)
}
   0x9   :  { %s1605_s27 = scalar_lea.vmem %s23_s19, 4096  ;;  %p1610_p4 = scmp.lt.s32.totalorder %s23_s19, %s23_s19 }
   0xa   :  { %p1606_p3 = scmp.ne.s32.totalorder %s23_s19, %s1605_s27  ;;  %p1611_p5 = scmp.lt.s32.totalorder %s1605_s27, %s1605_s27 }
   0xc   :  { %p1612_p6 = por %p1611_p5, %p1610_p4 }
   0xe   :  { %p1613_p7 = pnand %p1612_p6, %p1606_p3 }
  0x10   :  { %1616 = shalt.err (!%p1613_p7)
}
  0x11   :  { %s1668_s28 = smov 256   ;;  %s1669_s29 = smov 16  }
  0x12   :  { %28 = dma.hbm_to_vmem [thread:$0]  %s2004_s2, 4096, %s23_s19, [#allocation4], %s1668_s28, %s1668_s28, %s1669_s29  }
  0x13   :  { %s1670_s7 = smov [#allocation6]   ;;  %s1617_s11 = scalar_lea.hbm %s2005_s3, 2048 }
  0x14   :  { %s34_s8 = sshll.u32 %s1670_s7, 4  ;;  %p1618_p8 = scmp.ne.s32.totalorder %s2005_s3, %s1617_s11  ;;  %s35_s8 = int_to_ptr.vmem [resolvable:$true] %s34_s8 }
  0x15   :  { %p1621_p9 = scmp.lt.u32.totalorder %s1617_s11, %s2005_s3 }
  0x17   :  { %p1623_p10 = pnand %p1621_p9, %p1618_p8 }
  0x19   :  { %1626 = shalt.err (!%p1623_p10)
}
  0x1a   :  { %s1627_s16 = scalar_lea.vmem %s35_s8, 2048  ;;  %p1632_p12 = scmp.lt.s32.totalorder %s35_s8, %s35_s8 }
  0x1b   :  { %p1628_p11 = scmp.ne.s32.totalorder %s35_s8, %s1627_s16  ;;  %p1633_p13 = scmp.lt.s32.totalorder %s1627_s16, %s1627_s16 }
  0x1d   :  { %p1634_p0 = por %p1633_p13, %p1632_p12 }
  0x1f   :  { %p1635_p1 = pnand %p1634_p0, %p1628_p11 }
  0x21   :  { %1638 = shalt.err (!%p1635_p1)
}
  0x22   :  { %40 = dma.hbm_to_vmem [thread:$0]  %s2005_s3, 2048, %s35_s8, [#allocation7], %s1668_s28, %s1668_s28, %s1669_s29  }
  0x23   :  { %1661 = dma.done.wait [#allocation4], 4096  }
  0x24   :  { %1662 = vsyncadd [#allocation4], 4294963200 }
  0x25   :  { %1663 = dma.done.wait [#allocation7], 2048  }
  0x26   :  { %1664 = vsyncadd [#allocation7], 4294965248  ;;  %v51_v0 = vlaneseq  ;;  %v1671_v1 = vmov 0.0   ;;  %v1742_v5 = vld [vmem:[%s2003_s1] sm:$0xff]  ;;  %v230_v9 = vld [vmem:[#allocation3 + $0x8] sm:$0xff]  ;;  %s1673_s21 = smov [#allocation8]  }
  0x27   :  { %337 = vmatprep.mubr.f32.mxu1 %v1671_v1  ;;  %694 = vmatprep.mubr.f32.mxu0 %v1671_v1  ;;  %v1747_v6 = vld [vmem:[%s2002_s0] sm:$0xff]  ;;  %v232_v10 = vld [vmem:[#allocation3 + $0x18] sm:$0xff]  ;;  %v231_v15 = vld [vmem:[#allocation3 + $0x10] sm:$0xff]  ;;  %s1251_s22 = sshll.u32 %s1673_s21, 4  ;;  %s1252_s22 = int_to_ptr.vmem [resolvable:$true] %s1251_s22 }
  0x28   :  { %v1731_v2 = vshrl.u32 %v51_v0, 7  ;;  %v229_v11 = vld [vmem:[#allocation3] sm:$0xff]  ;;  %v234_v16 = vld [vmem:[#allocation3 + $0x28] sm:$0xff]  ;;  %v236_v17 = vld [vmem:[#allocation3 + $0x38] sm:$0xff]  ;;  %v1300_v18 = vpack.c.bf16 %v232_v10, %v230_v9  ;;  %s1639_s23 = scalar_lea.vmem %s1252_s22, 128  ;;  %p1644_p3 = scmp.lt.s32.totalorder %s1252_s22, %s1252_s22 }
  0x29   :  { %v1302_v19 = vpack.c.bf16 %v231_v15, %v229_v11  ;;  %v1304_v20 = vpack.c.bf16 %v236_v17, %v234_v16  ;;  %v233_v21 = vld [vmem:[#allocation3 + $0x20] sm:$0xff]  ;;  %v235_v22 = vld [vmem:[#allocation3 + $0x30] sm:$0xff]  ;;  %v238_v26 = vld [vmem:[#allocation3 + $0x48] sm:$0xff]  ;;  %p1640_p2 = scmp.ne.s32.totalorder %s1252_s22, %s1639_s23  ;;  %p1645_p4 = scmp.lt.s32.totalorder %s1639_s23, %s1639_s23 }
  0x2a   :  { %v1734_v3 = vsub.s32 0, %v1731_v2  ;;  %v1737_v4 = vsub.s32 1, %v1731_v2  ;;  %v69_v14 = vsub.s32 2, %v1731_v2  ;;  %v76_v25 = vsub.s32 3, %v1731_v2  ;;  %v240_v27 = vld [vmem:[#allocation3 + $0x58] sm:$0xff]  ;;  %1301 = vmatprep.subr.bf16.mxu1 %v1300_v18  ;;  %v237_v30 = vld [vmem:[#allocation3 + $0x40] sm:$0xff] }
  0x2b   :  { %1303 = vmatpush1.bf16.msra.mxu1 %v1302_v19  ;;  %v1306_v28 = vpack.c.bf16 %v235_v22, %v233_v21  ;;  %v1308_v29 = vpack.c.bf16 %v240_v27, %v238_v26  ;;  %v239_v31 = vld [vmem:[#allocation3 + $0x50] sm:$0xff]  ;;  %v83_v34 = vsub.s32 4, %v1731_v2  ;;  %v242_v35 = vld [vmem:[#allocation3 + $0x68] sm:$0xff]  ;;  %v244_v36 = vld [vmem:[#allocation3 + $0x78] sm:$0xff]  ;;  %v90_v50 = vsub.s32 5, %v1731_v2  ;;  %p1646_p5 = por %p1645_p4, %p1644_p3 }
  0x2c   :  { %v136_v7 = vrot.slane %v1742_v5, %v1734_v3  ;;  %v143_v8 = vrot.slane %v1742_v5, %v1737_v4  ;;  %v56_v12 = vrot.slane %v1747_v6, %v1734_v3  ;;  %v63_v13 = vrot.slane %v1747_v6, %v1737_v4  ;;  %1305 = vmatprep.subr.bf16.mxu1 %v1304_v20  ;;  %v403_v37 = vld [vmem:[#allocation6 + $0x8] sm:$0xff]  ;;  %v405_v38 = vld [vmem:[#allocation6 + $0x18] sm:$0xff]  ;;  %v402_v39 = vld [vmem:[#allocation6] sm:$0xff] }
  0x2d   :  { %v150_v23 = vrot.slane %v1742_v5, %v69_v14  ;;  %v70_v24 = vrot.slane %v1747_v6, %v69_v14  ;;  %v157_v32 = vrot.slane %v1742_v5, %v76_v25  ;;  %v77_v33 = vrot.slane %v1747_v6, %v76_v25  ;;  %v404_v40 = vld [vmem:[#allocation6 + $0x10] sm:$0xff]  ;;  %v407_v42 = vld [vmem:[#allocation6 + $0x28] sm:$0xff]  ;;  %v409_v43 = vld [vmem:[#allocation6 + $0x38] sm:$0xff]  ;;  %p1647_p6 = pnand %p1646_p5, %p1640_p2 }
  0x2e   :  { %138 = vbcast.lane.b32.xlu0 %v136_v7, 256  ;;  %145 = vbcast.lane.b32.xlu1 %v143_v8, 256  ;;  %v1310_v41 = vpack.c.bf16 %v239_v31, %v237_v30  ;;  %v1312_v44 = vpack.c.bf16 %v244_v36, %v242_v35  ;;  %v241_v45 = vld [vmem:[#allocation3 + $0x60] sm:$0xff]  ;;  %v243_v46 = vld [vmem:[#allocation3 + $0x70] sm:$0xff]  ;;  %v1764_v47 = vpack.c.bf16 %v405_v38, %v403_v37  ;;  %v246_v51 = vld [vmem:[#allocation3 + $0x88] sm:$0xff]  ;;  %v97_v8 = vsub.s32 6, %v1731_v2 }
  0x2f   :  { %1307 = vmatpush1.bf16.msra.mxu1 %v1306_v28  ;;  %v164_v48 = vrot.slane %v1742_v5, %v83_v34  ;;  %v84_v49 = vrot.slane %v1747_v6, %v83_v34  ;;  %v248_v52 = vld [vmem:[#allocation3 + $0x98] sm:$0xff]  ;;  %v1769_v53 = vpack.c.bf16 %v404_v40, %v402_v39  ;;  %v1771_v54 = vpack.c.bf16 %v409_v43, %v407_v42  ;;  %v406_v55 = vld [vmem:[#allocation6 + $0x20] sm:$0xff]  ;;  %v408_v56 = vld [vmem:[#allocation6 + $0x30] sm:$0xff] }
  0x30   :  { %1309 = vmatprep.subr.bf16.mxu1 %v1308_v29  ;;  %1365 = vmatprep.subr.bf16.mxu0 %v1764_v47  ;;  %v1314_v57 = vpack.c.bf16 %v243_v46, %v241_v45  ;;  %v411_v58 = vld [vmem:[#allocation6 + $0x48] sm:$0xff]  ;;  %v413_v59 = vld [vmem:[#allocation6 + $0x58] sm:$0xff]  ;;  %v1316_v60 = vpack.c.bf16 %v248_v52, %v246_v51  ;;  %v245_v61 = vld [vmem:[#allocation3 + $0x80] sm:$0xff]  ;;  %v171_v63 = vrot.slane %v1742_v5, %v90_v50 }
  0x31   :  { %1367 = vmatpush1.bf16.msra.mxu0 %v1769_v53  ;;  %v247_v62 = vld [vmem:[#allocation3 + $0x90] sm:$0xff]  ;;  %v91_v7 = vrot.slane %v1747_v6, %v90_v50  ;;  %v250_v9 = vld [vmem:[#allocation3 + $0xa8] sm:$0xff]  ;;  %v252_v10 = vld [vmem:[#allocation3 + $0xb8] sm:$0xff]  ;;  %v1779_v11 = vpack.c.bf16 %v408_v56, %v406_v55  ;;  %v178_v21 = vrot.slane %v1742_v5, %v97_v8  ;;  %v98_v22 = vrot.slane %v1747_v6, %v97_v8 }
  0x32   :  { %58 = vbcast.lane.b32.xlu0 %v56_v12, 256  ;;  %65 = vbcast.lane.b32.xlu1 %v63_v13, 256  ;;  %v1781_v12 = vpack.c.bf16 %v413_v59, %v411_v58  ;;  %v410_v13 = vld [vmem:[#allocation6 + $0x40] sm:$0xff]  ;;  %v412_v14 = vld [vmem:[#allocation6 + $0x50] sm:$0xff]  ;;  %v1318_v15 = vpack.c.bf16 %v247_v62, %v245_v61  ;;  %v1320_v17 = vpack.c.bf16 %v252_v10, %v250_v9  ;;  %v415_v19 = vld [vmem:[#allocation6 + $0x68] sm:$0xff] }
  0x33   :  { %1311 = vmatpush1.bf16.msra.mxu1 %v1310_v41  ;;  %1369 = vmatprep.subr.bf16.mxu0 %v1771_v54  ;;  %v249_v16 = vld [vmem:[#allocation3 + $0xa0] sm:$0xff]  ;;  %v251_v18 = vld [vmem:[#allocation3 + $0xb0] sm:$0xff]  ;;  %v417_v20 = vld [vmem:[#allocation6 + $0x78] sm:$0xff]  ;;  %v1788_v26 = vpack.c.bf16 %v412_v14, %v410_v13 }
  0x34   :  { %1313 = vmatprep.subr.bf16.mxu1 %v1312_v44  ;;  %v256_v25 = vld [vmem:[#allocation3 + $0xd8] sm:$0xff]  ;;  %v1790_v27 = vpack.c.bf16 %v417_v20, %v415_v19  ;;  %v414_v28 = vld [vmem:[#allocation6 + $0x60] sm:$0xff]  ;;  %v416_v29 = vld [vmem:[#allocation6 + $0x70] sm:$0xff]  ;;  %v1322_v30 = vpack.c.bf16 %v251_v18, %v249_v16 }
  0x35   :  { %1371 = vmatpush1.bf16.msra.mxu0 %v1779_v11  ;;  %v258_v35 = vld [vmem:[#allocation3 + $0xe8] sm:$0xff]  ;;  %v260_v36 = vld [vmem:[#allocation3 + $0xf8] sm:$0xff]  ;;  %v1796_v37 = vpack.c.bf16 %v416_v29, %v414_v28  ;;  %v257_v40 = vld [vmem:[#allocation3 + $0xe0] sm:$0xff] }
  0x36   :  { %152 = vbcast.lane.b32.xlu0 %v150_v23, 256  ;;  %72 = vbcast.lane.b32.xlu1 %v70_v24, 256  ;;  %v104_v23 = vsub.s32 7, %v1731_v2  ;;  %v254_v24 = vld [vmem:[#allocation3 + $0xc8] sm:$0xff]  ;;  %v1328_v39 = vpack.c.bf16 %v260_v36, %v258_v35  ;;  %v259_v41 = vld [vmem:[#allocation3 + $0xf0] sm:$0xff] }
  0x37   :  { %1315 = vmatpush1.bf16.msra.mxu1 %v1314_v57  ;;  %1373 = vmatprep.subr.bf16.mxu0 %v1781_v12  ;;  %v1324_v31 = vpack.c.bf16 %v256_v25, %v254_v24 }
  0x38   :  { %1317 = vmatprep.subr.bf16.mxu1 %v1316_v60  ;;  %v185_v2 = vrot.slane %v1742_v5, %v104_v23  ;;  %v105_v34 = vrot.slane %v1747_v6, %v104_v23  ;;  %v1330_v5 = vpack.c.bf16 %v259_v41, %v257_v40  ;;  %v1802_v6 = vand.u32 127, %v51_v0 }
  0x39   :  { %1375 = vmatpush1.bf16.msra.mxu0 %v1788_v26 }
  0x3a   :  { %159 = vbcast.lane.b32.xlu0 %v157_v32, 256  ;;  %79 = vbcast.lane.b32.xlu1 %v77_v33, 256  ;;  %v253_v32 = vld [vmem:[#allocation3 + $0xc0] sm:$0xff]  ;;  %v255_v33 = vld [vmem:[#allocation3 + $0xd0] sm:$0xff] }
  0x3b   :  { %1319 = vmatpush1.bf16.msra.mxu1 %v1318_v15  ;;  %1377 = vmatprep.subr.bf16.mxu0 %v1790_v27  ;;  %v1326_v38 = vpack.c.bf16 %v255_v33, %v253_v32 }
  0x3c   :  { %1321 = vmatprep.subr.bf16.mxu1 %v1320_v17 }
  0x3d   :  { %1379 = vmatpush1.bf16.msra.mxu0 %v1796_v37 }
  0x3e   :  { %166 = vbcast.lane.b32.xlu0 %v164_v48, 256  ;;  %86 = vbcast.lane.b32.xlu1 %v84_v49, 256 }
  0x3f   :  { %1323 = vmatpush1.bf16.msra.mxu1 %v1322_v30  ;;  %1381 = vmatprep.subr.bf16.mxu0 %v1764_v47 }
  0x40   :  { %1325 = vmatprep.subr.bf16.mxu1 %v1324_v31 }
  0x42   :  { %173 = vbcast.lane.b32.xlu0 %v171_v63, 256  ;;  %93 = vbcast.lane.b32.xlu1 %v91_v7, 256 }
  0x43   :  { %1327 = vmatpush1.bf16.msra.mxu1 %v1326_v38 }
  0x44   :  { %1329 = vmatprep.subr.bf16.mxu1 %v1328_v39 }
  0x46   :  { %180 = vbcast.lane.b32.xlu0 %v178_v21, 256  ;;  %100 = vbcast.lane.b32.xlu1 %v98_v22, 256 }
  0x47   :  { %1331 = vmatpush1.bf16.msra.mxu1 %v1330_v5 }
  0x48   :  { %1333 = vmatprep.subr.bf16.mxu1 %v1764_v47 }
  0x4a   :  { %187 = vbcast.lane.b32.xlu0 %v185_v2, 256  ;;  %107 = vbcast.lane.b32.xlu1 %v105_v34, 256 }
  0xa0   :  { %v139_v42 = vpop.permute.xlu0 %138  ;;  %v146_v43 = vpop.permute.xlu1 %145 }
  0xa1   :  { %v189_v44 = vadd.s32 64, %v139_v42  ;;  %v190_v45 = vadd.s32 64, %v146_v43 }
  0xa3   :  { %vm197_vm0 = vcmp.eq.s32.totalorder %v1802_v6, %v189_v44  ;;  %vm198_vm1 = vcmp.eq.s32.totalorder %v1802_v6, %v190_v45 }
  0xa4   :  { %v59_v46 = vpop.permute.xlu0 %58  ;;  %v66_v48 = vpop.permute.xlu1 %65  ;;  %v1269_v49 = vsel %vm197_vm0, 1.0, %v1671_v1  ;;  %v1270_v51 = vsel %vm198_vm1, 1.0, %v1671_v1  ;;  %vm420_vm0 = vcmask 523264  }
  0xa5   :  { %vm109_vm2 = vcmp.eq.s32.totalorder %v1802_v6, %v59_v46  ;;  %vm110_vm3 = vcmp.eq.s32.totalorder %v1802_v6, %v66_v48  ;;  %v261_v48 = vld [vmem:[%s2006_s4] sm:$0x3]  ;;  %s1672_s4 = smov 64  }
  0xa6   :  { %v1261_v50 = vsel %vm109_vm2, 1.0, %v1671_v1  ;;  %v1262_v52 = vsel %vm110_vm3, 1.0, %v1671_v1 }
  0xa7   :  { %v221_v0 = vadd.f32 %v1269_v49, %v1261_v50  ;;  %v222_v59 = vadd.f32 %v1270_v51, %v1262_v52 }
  0xa8   :  { %v153_v55 = vpop.permute.xlu0 %152  ;;  %v73_v56 = vpop.permute.xlu1 %72 }
  0xa9   :  { %338 = vmatmul.mubr.f32.vlgmr.msra.gmra.mrb[0].mxu1 %v221_v0  ;;  %v191_v57 = vadd.s32 64, %v153_v55  ;;  %vm111_vm4 = vcmp.eq.s32.totalorder %v1802_v6, %v73_v56  ;;  %v1889_v0 = vrot.slane %v261_v48, %v1734_v3 }
  0xaa   :  { %1335 = vmatpush1.bf16.msra.mxu1 %v1769_v53  ;;  %v1263_v58 = vsel %vm111_vm4, 1.0, %v1671_v1  ;;  %343 = vmatprep.mubr.f32.mxu1 %v1671_v1 }
  0xab   :  { %vm199_vm5 = vcmp.eq.s32.totalorder %v1802_v6, %v191_v57  ;;  %1337 = vmatprep.subr.bf16.mxu1 %v1771_v54  ;;  %v1893_v57 = vrot.slane %v261_v48, %v1737_v4 }
  0xac   :  { %v1271_v60 = vsel %vm199_vm5, 1.0, %v1671_v1  ;;  %v160_v61 = vpop.permute.xlu0 %159  ;;  %v80_v62 = vpop.permute.xlu1 %79 }
  0xad   :  { %v223_v63 = vadd.f32 %v1271_v60, %v1263_v58  ;;  %344 = vmatmul.mubr.f32.gmra.mrb[2].mxu1 %v222_v59  ;;  %v192_v7 = vadd.s32 64, %v160_v61  ;;  %vm112_vm6 = vcmp.eq.s32.totalorder %v1802_v6, %v80_v62 }
  0xae   :  { %v1264_v8 = vsel %vm112_vm6, 1.0, %v1671_v1  ;;  %349 = vmatprep.mubr.f32.mxu1 %v1671_v1  ;;  %1339 = vmatpush1.bf16.msra.mxu1 %v1779_v11 }
  0xaf   :  { %vm200_vm7 = vcmp.eq.s32.totalorder %v1802_v6, %v192_v7  ;;  %1341 = vmatprep.subr.bf16.mxu1 %v1781_v12 }
  0xb0   :  { %v1272_v9 = vsel %vm200_vm7, 1.0, %v1671_v1  ;;  %v167_v10 = vpop.permute.xlu0 %166  ;;  %v87_v13 = vpop.permute.xlu1 %86 }
  0xb1   :  { %v224_v14 = vadd.f32 %v1272_v9, %v1264_v8  ;;  %350 = vmatmul.mubr.f32.gmra.mrb[4].mxu1 %v223_v63  ;;  %v193_v15 = vadd.s32 64, %v167_v10  ;;  %vm113_vm8 = vcmp.eq.s32.totalorder %v1802_v6, %v87_v13 }
  0xb2   :  { %v1265_v16 = vsel %vm113_vm8, 1.0, %v1671_v1  ;;  %355 = vmatprep.mubr.f32.mxu1 %v1671_v1  ;;  %1343 = vmatpush1.bf16.msra.mxu1 %v1788_v26 }
  0xb3   :  { %vm201_vm9 = vcmp.eq.s32.totalorder %v1802_v6, %v193_v15  ;;  %1345 = vmatprep.subr.bf16.mxu1 %v1790_v27 }
  0xb4   :  { %v1273_v17 = vsel %vm201_vm9, 1.0, %v1671_v1  ;;  %v174_v18 = vpop.permute.xlu0 %173  ;;  %v94_v19 = vpop.permute.xlu1 %93 }
  0xb5   :  { %v225_v20 = vadd.f32 %v1273_v17, %v1265_v16  ;;  %356 = vmatmul.mubr.f32.gmra.mrb[6].mxu1 %v224_v14  ;;  %v194_v21 = vadd.s32 64, %v174_v18  ;;  %vm114_vm10 = vcmp.eq.s32.totalorder %v1802_v6, %v94_v19 }
  0xb6   :  { %v1266_v22 = vsel %vm114_vm10, 1.0, %v1671_v1  ;;  %361 = vmatprep.mubr.f32.mxu1 %v1671_v1  ;;  %1347 = vmatpush1.bf16.msra.mxu1 %v1796_v37 }
  0xb7   :  { %vm202_vm11 = vcmp.eq.s32.totalorder %v1802_v6, %v194_v21  ;;  %1349 = vmatprep.subr.bf16.mxu1 %v1764_v47 }
  0xb8   :  { %v1274_v23 = vsel %vm202_vm11, 1.0, %v1671_v1  ;;  %v181_v24 = vpop.permute.xlu0 %180  ;;  %v101_v25 = vpop.permute.xlu1 %100 }
  0xb9   :  { %v226_v28 = vadd.f32 %v1274_v23, %v1266_v22  ;;  %362 = vmatmul.mubr.f32.gmra.mrb[8].mxu1 %v225_v20  ;;  %v195_v29 = vadd.s32 64, %v181_v24  ;;  %vm115_vm12 = vcmp.eq.s32.totalorder %v1802_v6, %v101_v25 }
  0xba   :  { %v1267_v30 = vsel %vm115_vm12, 1.0, %v1671_v1  ;;  %367 = vmatprep.mubr.f32.mxu1 %v1671_v1 }
  0xbb   :  { %vm203_vm13 = vcmp.eq.s32.totalorder %v1802_v6, %v195_v29 }
  0xbc   :  { %v1275_v31 = vsel %vm203_vm13, 1.0, %v1671_v1  ;;  %v188_v32 = vpop.permute.xlu0 %187  ;;  %v108_v33 = vpop.permute.xlu1 %107 }
  0xbd   :  { %v227_v2 = vadd.f32 %v1275_v31, %v1267_v30  ;;  %368 = vmatmul.mubr.f32.gmra.mrb[10].mxu1 %v226_v28  ;;  %v196_v34 = vadd.s32 64, %v188_v32  ;;  %vm116_vm14 = vcmp.eq.s32.totalorder %v1802_v6, %v108_v33 }
  0xbe   :  { %v1268_v35 = vsel %vm116_vm14, 1.0, %v1671_v1  ;;  %373 = vmatprep.mubr.f32.mxu1 %v1671_v1 }
  0xbf   :  { %vm204_vm15 = vcmp.eq.s32.totalorder %v1802_v6, %v196_v34 }
  0xc0   :  { %v1276_v36 = vsel %vm204_vm15, 1.0, %v1671_v1 }
  0xc1   :  { %v228_v38 = vadd.f32 %v1276_v36, %v1268_v35  ;;  %374 = vmatmul.mubr.f32.gmra.mrb[12].mxu1 %v227_v2 }
  0xc2   :  { %379 = vmatprep.mubr.f32.mxu1 %v1671_v1 }
  0xc5   :  { %380 = vmatmul.mubr.f32.gmra.mrb[14].mxu1 %v228_v38 }
  0xc6   :  { %488 = vmatprep.mubr.f32.mxu1 %v1671_v1 }
  0xc9   :  { %489 = vmatmul.mubr.f32.vlgmr.msra.gmra.mrb[0].mxu1 %v1671_v1 }
  0xca   :  { %1351 = vmatpush1.bf16.msra.mxu1 %v1769_v53  ;;  %591 = vmatprep.mubr.f32.mxu1 %v1671_v1 }
  0xcb   :  { %1353 = vmatprep.subr.bf16.mxu1 %v1771_v54 }
  0xce   :  { %1355 = vmatpush1.bf16.msra.mxu1 %v1779_v11 }
  0xcf   :  { %1357 = vmatprep.subr.bf16.mxu1 %v1781_v12 }
  0xd2   :  { %1359 = vmatpush1.bf16.msra.mxu1 %v1788_v26 }
  0xd3   :  { %1361 = vmatprep.subr.bf16.mxu1 %v1790_v27 }
  0xd6   :  { %1363 = vmatpush1.bf16.msra.mxu1 %v1796_v37 }
 0x184   :  { %v1861_v39 = vpop.f32.mrb[4].mxu1 }
 0x185   :  { %v1863_v40 = vpop.f32.mrb[5].mxu1  ;;  %v352_v48 = vadd.f32 %v1861_v39, %v1889_v0 }
 0x188   :  { %v1865_v41 = vpop.f32.mrb[6].mxu1 }
 0x189   :  { %v1867_v5 = vpop.f32.mrb[7].mxu1 }
 0x18c   :  { %v1869_v6 = vpop.f32.mrb[8].mxu1 }
 0x18d   :  { %v1871_v42 = vpop.f32.mrb[9].mxu1 }
 0x190   :  { %v1873_v43 = vpop.f32.mrb[10].mxu1 }
 0x191   :  { %v1875_v44 = vpop.f32.mrb[11].mxu1 }
 0x194   :  { %v1877_v45 = vpop.f32.mrb[12].mxu1 }
 0x195   :  { %v1879_v46 = vpop.f32.mrb[13].mxu1 }
 0x198   :  { %v1884_v49 = vpop.f32.mrb[14].mxu1 }
 0x199   :  { %v1886_v50 = vpop.f32.mrb[15].mxu1 }
 0x19c   :  { %v490_v51 = vpop.f32.mrb[0].mxu1 }
 0x19d   :  { %v1460_v52 = vadd.f32 %v490_v51, %v1889_v0  ;;  %v492_v55 = vpop.f32.mrb[1].mxu1  ;;  %v354_v51 = vadd.f32 %v1863_v40, %v1893_v57 }
 0x19e   :  { %v1461_v58 = vadd.f32 %v492_v55, %v1893_v57 }
 0x19f   :  { %v1277_v56 = vmul.f32 -1.442695, %v1460_v52 }
 0x1a0   :  { %v1278_v3 = vmul.f32 -1.442695, %v1461_v58 }
 0x1a1   :  { %1499 = vpow2.f32 %v1277_v56 }
 0x1a2   :  { %1501 = vtanh.f32 %v1461_v58 }
 0x1ab   :  { %v1500_v59 = vpop.eup %1499 }
 0x1ac   :  { %v500_v60 = vadd.f32 1.0, %v1500_v59  ;;  %v1502_v61 = vpop.eup %1501 }
 0x1ae   :  { %1503 = vrcp.f32 %v500_v60 }
 0x1af   :  { %1505 = vpow2.f32 %v1278_v3 }
 0x1b8   :  { %v1504_v62 = vpop.eup %1503 }
 0x1b9   :  { %v511_v63 = vmul.f32 %v1504_v62, %v1502_v61  ;;  %v1506_v7 = vpop.eup %1505  ;;  %v510_v9 = vmul.f32 0.0, %v1504_v62 }
 0x1ba   :  { %v507_v8 = vadd.f32 1.0, %v1506_v7 }
 0x1bb   :  { %513 = vrot.lane.b32.xlu0 %v511_v63, %s1672_s4 }
 0x1bc   :  { %1507 = vrcp.f32 %v507_v8 }
 0x1c6   :  { %v1508_v13 = vpop.eup %1507 }
 0x22d   :  { %v514_v10 = vpop.permute.xlu0 %513 }
 0x22e   :  { %v516_v4 = vadd.f32 %v514_v10, %v510_v9 }
 0x230   :  { %1509 = vtanh.f32 %v516_v4 }
 0x23a   :  { %v1510_v14 = vpop.eup %1509 }
 0x23b   :  { %v518_v15 = vmul.f32 %v1510_v14, %v1508_v13 }
 0x23d   :  { %523 = vrot.lane.b32.xlu1 %v518_v15, %s1672_s4 }
 0x2af   :  { %v524_v16 = vpop.permute.xlu1 %523 }
 0x2b0   :  { %1279 = vmatmul.mubr.msk.f32.vlgmr.msra.gmra.mrb[2].mxu1 %vm420_vm0, %v524_v16  ;;  %v358_v16 = vadd.f32 %v1865_v41, %v1889_v0 }
 0x383   :  { %v593_v17 = vpop.f32.mrb[2].mxu1 }
 0x384   :  { %v1462_v18 = vadd.f32 %v593_v17, %v1889_v0  ;;  %v595_v19 = vpop.f32.mrb[3].mxu1  ;;  %v360_v17 = vadd.f32 %v1867_v5, %v1893_v57 }
 0x385   :  { %v1463_v21 = vadd.f32 %v595_v19, %v1893_v57 }
 0x386   :  { %v1280_v20 = vmul.f32 -1.442695, %v1462_v18 }
 0x387   :  { %v1281_v29 = vmul.f32 -1.442695, %v1463_v21 }
 0x388   :  { %1511 = vpow2.f32 %v1280_v20 }
 0x389   :  { %1513 = vtanh.f32 %v1463_v21 }
 0x392   :  { %v1512_v22 = vpop.eup %1511 }
 0x393   :  { %v603_v23 = vadd.f32 1.0, %v1512_v22  ;;  %v1514_v24 = vpop.eup %1513 }
 0x395   :  { %1515 = vrcp.f32 %v603_v23 }
 0x396   :  { %1517 = vpow2.f32 %v1281_v29 }
 0x39f   :  { %v1516_v25 = vpop.eup %1515 }
 0x3a0   :  { %v614_v28 = vmul.f32 %v1516_v25, %v1514_v24  ;;  %v1518_v30 = vpop.eup %1517  ;;  %v613_v32 = vmul.f32 %v1516_v25, %v516_v4 }
 0x3a1   :  { %v610_v31 = vadd.f32 1.0, %v1518_v30 }
 0x3a2   :  { %616 = vrot.lane.b32.xlu0 %v614_v28, %s1672_s4 }
 0x3a3   :  { %1519 = vrcp.f32 %v610_v31 }
 0x3ad   :  { %v1520_v34 = vpop.eup %1519 }
 0x414   :  { %v617_v33 = vpop.permute.xlu0 %616 }
 0x415   :  { %v619_v2 = vadd.f32 %v617_v33, %v613_v32 }
 0x417   :  { %1521 = vtanh.f32 %v619_v2 }
 0x421   :  { %v1522_v35 = vpop.eup %1521 }
 0x422   :  { %v621_v36 = vmul.f32 %v1522_v35, %v1520_v34 }
 0x424   :  { %626 = vrot.lane.b32.xlu1 %v621_v36, %s1672_s4 }
 0x496   :  { %v627_v38 = vpop.permute.xlu1 %626 }
 0x497   :  { %1282 = vmatmul.mubr.msk.f32.vlgmr.msra.gmra.mrb[0].mxu0 %vm420_vm0, %v627_v38  ;;  %v364_v38 = vadd.f32 %v1869_v6, %v1889_v0 }
 0x498   :  { %1383 = vmatpush1.bf16.msra.mxu0 %v1769_v53  ;;  %797 = vmatprep.mubr.f32.mxu0 %v1671_v1 }
 0x499   :  { %1385 = vmatprep.subr.bf16.mxu0 %v1771_v54 }
 0x49c   :  { %1387 = vmatpush1.bf16.msra.mxu0 %v1779_v11 }
 0x49d   :  { %1389 = vmatprep.subr.bf16.mxu0 %v1781_v12 }
 0x4a0   :  { %1391 = vmatpush1.bf16.msra.mxu0 %v1788_v26 }
 0x4a1   :  { %1393 = vmatprep.subr.bf16.mxu0 %v1790_v27 }
 0x4a4   :  { %1395 = vmatpush1.bf16.msra.mxu0 %v1796_v37 }
 0x4a5   :  { %1397 = vmatprep.subr.bf16.mxu0 %v1764_v47 }
 0x56a   :  { %v696_v52 = vpop.f32.mrb[0].mxu0 }
 0x56b   :  { %v701_v55 = vadd.f32 %v696_v52, %v352_v48  ;;  %v698_v56 = vpop.f32.mrb[1].mxu0  ;;  %v366_v48 = vadd.f32 %v1871_v42, %v1893_v57 }
 0x56c   :  { %v702_v58 = vadd.f32 %v698_v56, %v354_v51 }
 0x56d   :  { %v1283_v59 = vmul.f32 -1.442695, %v701_v55 }
 0x56e   :  { %v1284_v7 = vmul.f32 -1.442695, %v702_v58 }
 0x56f   :  { %1523 = vpow2.f32 %v1283_v59 }
 0x570   :  { %1525 = vtanh.f32 %v702_v58 }
 0x579   :  { %v1524_v60 = vpop.eup %1523 }
 0x57a   :  { %v706_v61 = vadd.f32 1.0, %v1524_v60  ;;  %v1526_v62 = vpop.eup %1525 }
 0x57c   :  { %1527 = vrcp.f32 %v706_v61 }
 0x57d   :  { %1529 = vpow2.f32 %v1284_v7 }
 0x586   :  { %v1528_v63 = vpop.eup %1527 }
 0x587   :  { %v717_v3 = vmul.f32 %v1528_v63, %v1526_v62  ;;  %v1530_v39 = vpop.eup %1529  ;;  %v716_v40 = vmul.f32 %v1528_v63, %v619_v2 }
 0x588   :  { %v713_v8 = vadd.f32 1.0, %v1530_v39 }
 0x589   :  { %719 = vrot.lane.b32.xlu0 %v717_v3, %s1672_s4 }
 0x58a   :  { %1531 = vrcp.f32 %v713_v8 }
 0x594   :  { %v1532_v4 = vpop.eup %1531 }
 0x5fb   :  { %v720_v9 = vpop.permute.xlu0 %719 }
 0x5fc   :  { %v722_v10 = vadd.f32 %v720_v9, %v716_v40 }
 0x5fe   :  { %1533 = vtanh.f32 %v722_v10 }
 0x608   :  { %v1534_v13 = vpop.eup %1533 }
 0x609   :  { %v724_v14 = vmul.f32 %v1534_v13, %v1532_v4  ;;  %v370_v13 = vadd.f32 %v1873_v43, %v1889_v0 }
 0x60b   :  { %729 = vrot.lane.b32.xlu1 %v724_v14, %s1672_s4  ;;  %v372_v14 = vadd.f32 %v1875_v44, %v1893_v57 }
 0x67d   :  { %v730_v15 = vpop.permute.xlu1 %729 }
 0x67e   :  { %1285 = vmatmul.mubr.msk.f32.vlgmr.msra.gmra.mrb[2].mxu0 %vm420_vm0, %v730_v15 }
 0x67f   :  { %1399 = vmatpush1.bf16.msra.mxu0 %v1769_v53  ;;  %900 = vmatprep.mubr.f32.mxu0 %v1671_v1 }
 0x680   :  { %1401 = vmatprep.subr.bf16.mxu0 %v1771_v54 }
 0x683   :  { %1403 = vmatpush1.bf16.msra.mxu0 %v1779_v11 }
 0x684   :  { %1405 = vmatprep.subr.bf16.mxu0 %v1781_v12 }
 0x687   :  { %1407 = vmatpush1.bf16.msra.mxu0 %v1788_v26 }
 0x688   :  { %1409 = vmatprep.subr.bf16.mxu0 %v1790_v27 }
 0x68b   :  { %1411 = vmatpush1.bf16.msra.mxu0 %v1796_v37 }
 0x68c   :  { %1413 = vmatprep.subr.bf16.mxu0 %v1764_v47 }
 0x751   :  { %v799_v18 = vpop.f32.mrb[2].mxu0 }
 0x752   :  { %v804_v19 = vadd.f32 %v799_v18, %v358_v16  ;;  %v801_v20 = vpop.f32.mrb[3].mxu0 }
 0x753   :  { %v805_v21 = vadd.f32 %v801_v20, %v360_v17 }
 0x754   :  { %v1286_v22 = vmul.f32 -1.442695, %v804_v19 }
 0x755   :  { %v1287_v30 = vmul.f32 -1.442695, %v805_v21 }
 0x756   :  { %1535 = vpow2.f32 %v1286_v22 }
 0x757   :  { %1537 = vtanh.f32 %v805_v21 }
 0x760   :  { %v1536_v23 = vpop.eup %1535 }
 0x761   :  { %v809_v24 = vadd.f32 1.0, %v1536_v23  ;;  %v1538_v25 = vpop.eup %1537 }
 0x763   :  { %1539 = vrcp.f32 %v809_v24 }
 0x764   :  { %1541 = vpow2.f32 %v1287_v30 }
 0x76d   :  { %v1540_v28 = vpop.eup %1539 }
 0x76e   :  { %v820_v29 = vmul.f32 %v1540_v28, %v1538_v25  ;;  %v1542_v41 = vpop.eup %1541  ;;  %v819_v5 = vmul.f32 %v1540_v28, %v722_v10 }
 0x76f   :  { %v816_v31 = vadd.f32 1.0, %v1542_v41 }
 0x770   :  { %822 = vrot.lane.b32.xlu0 %v820_v29, %s1672_s4 }
 0x771   :  { %1543 = vrcp.f32 %v816_v31 }
 0x77b   :  { %v1544_v2 = vpop.eup %1543 }
 0x7e2   :  { %v823_v32 = vpop.permute.xlu0 %822 }
 0x7e3   :  { %v825_v33 = vadd.f32 %v823_v32, %v819_v5  ;;  %v376_v32 = vadd.f32 %v1877_v45, %v1889_v0 }
 0x7e5   :  { %1545 = vtanh.f32 %v825_v33 }
 0x7ef   :  { %v1546_v34 = vpop.eup %1545 }
 0x7f0   :  { %v827_v35 = vmul.f32 %v1546_v34, %v1544_v2 }
 0x7f2   :  { %832 = vrot.lane.b32.xlu1 %v827_v35, %s1672_s4 }
 0x864   :  { %v833_v36 = vpop.permute.xlu1 %832 }
 0x865   :  { %1288 = vmatmul.mubr.msk.f32.vlgmr.msra.gmra.mrb[4].mxu0 %vm420_vm0, %v833_v36 }
 0x866   :  { %1415 = vmatpush1.bf16.msra.mxu0 %v1769_v53  ;;  %1003 = vmatprep.mubr.f32.mxu0 %v1671_v1 }
 0x867   :  { %1417 = vmatprep.subr.bf16.mxu0 %v1771_v54 }
 0x86a   :  { %1419 = vmatpush1.bf16.msra.mxu0 %v1779_v11 }
 0x86b   :  { %1421 = vmatprep.subr.bf16.mxu0 %v1781_v12 }
 0x86e   :  { %1423 = vmatpush1.bf16.msra.mxu0 %v1788_v26 }
 0x86f   :  { %1425 = vmatprep.subr.bf16.mxu0 %v1790_v27 }
 0x872   :  { %1427 = vmatpush1.bf16.msra.mxu0 %v1796_v37 }
 0x873   :  { %1429 = vmatprep.subr.bf16.mxu0 %v1764_v47 }
 0x938   :  { %v902_v51 = vpop.f32.mrb[4].mxu0 }
 0x939   :  { %v907_v52 = vadd.f32 %v902_v51, %v364_v38  ;;  %v904_v55 = vpop.f32.mrb[5].mxu0 }
 0x93a   :  { %v908_v56 = vadd.f32 %v904_v55, %v366_v48 }
 0x93b   :  { %v1289_v58 = vmul.f32 -1.442695, %v907_v52 }
 0x93c   :  { %v1290_v3 = vmul.f32 -1.442695, %v908_v56 }
 0x93d   :  { %1547 = vpow2.f32 %v1289_v58  ;;  %v382_v58 = vadd.f32 %v1884_v49, %v1889_v0 }
 0x93e   :  { %1549 = vtanh.f32 %v908_v56 }
 0x947   :  { %v1548_v59 = vpop.eup %1547 }
 0x948   :  { %v912_v60 = vadd.f32 1.0, %v1548_v59  ;;  %v1550_v61 = vpop.eup %1549  ;;  %v384_v59 = vadd.f32 %v1886_v50, %v1893_v57 }
 0x94a   :  { %1551 = vrcp.f32 %v912_v60 }
 0x94b   :  { %1553 = vpow2.f32 %v1290_v3 }
 0x954   :  { %v1552_v62 = vpop.eup %1551 }
 0x955   :  { %v923_v63 = vmul.f32 %v1552_v62, %v1550_v61  ;;  %v1554_v6 = vpop.eup %1553  ;;  %v922_v42 = vmul.f32 %v1552_v62, %v825_v33 }
 0x956   :  { %v919_v7 = vadd.f32 1.0, %v1554_v6 }
 0x957   :  { %925 = vrot.lane.b32.xlu0 %v923_v63, %s1672_s4 }
 0x958   :  { %1555 = vrcp.f32 %v919_v7 }
 0x962   :  { %v1556_v40 = vpop.eup %1555 }
 0x9c9   :  { %v926_v39 = vpop.permute.xlu0 %925 }
 0x9ca   :  { %v928_v8 = vadd.f32 %v926_v39, %v922_v42 }
 0x9cc   :  { %1557 = vtanh.f32 %v928_v8 }
 0x9d6   :  { %v1558_v9 = vpop.eup %1557 }
 0x9d7   :  { %v930_v10 = vmul.f32 %v1558_v9, %v1556_v40 }
 0x9d9   :  { %935 = vrot.lane.b32.xlu1 %v930_v10, %s1672_s4 }
 0xa4b   :  { %v936_v4 = vpop.permute.xlu1 %935 }
 0xa4c   :  { %1291 = vmatmul.mubr.msk.f32.vlgmr.msra.gmra.mrb[6].mxu0 %vm420_vm0, %v936_v4 }
 0xa4d   :  { %1431 = vmatpush1.bf16.msra.mxu0 %v1769_v53  ;;  %1106 = vmatprep.mubr.f32.mxu0 %v1671_v1 }
 0xa4e   :  { %1433 = vmatprep.subr.bf16.mxu0 %v1771_v54 }
 0xa51   :  { %1435 = vmatpush1.bf16.msra.mxu0 %v1779_v11 }
 0xa52   :  { %1437 = vmatprep.subr.bf16.mxu0 %v1781_v12 }
 0xa55   :  { %1439 = vmatpush1.bf16.msra.mxu0 %v1788_v26 }
 0xa56   :  { %1441 = vmatprep.subr.bf16.mxu0 %v1790_v27 }
 0xa59   :  { %1443 = vmatpush1.bf16.msra.mxu0 %v1796_v37 }
 0xa5a   :  { %1445 = vmatprep.subr.bf16.mxu0 %v1764_v47 }
 0xb1f   :  { %v1005_v15 = vpop.f32.mrb[6].mxu0 }
 0xb20   :  { %v1010_v16 = vadd.f32 %v1005_v15, %v370_v13  ;;  %v1007_v17 = vpop.f32.mrb[7].mxu0 }
 0xb21   :  { %v1011_v18 = vadd.f32 %v1007_v17, %v372_v14 }
 0xb22   :  { %v1292_v19 = vmul.f32 -1.442695, %v1010_v16 }
 0xb23   :  { %v1293_v47 = vmul.f32 -1.442695, %v1011_v18 }
 0xb24   :  { %1559 = vpow2.f32 %v1292_v19 }
 0xb25   :  { %1561 = vtanh.f32 %v1011_v18 }
 0xb2e   :  { %v1560_v20 = vpop.eup %1559 }
 0xb2f   :  { %v1015_v21 = vadd.f32 1.0, %v1560_v20  ;;  %v1562_v22 = vpop.eup %1561 }
 0xb31   :  { %1563 = vrcp.f32 %v1015_v21 }
 0xb32   :  { %1565 = vpow2.f32 %v1293_v47 }
 0xb3b   :  { %v1564_v23 = vpop.eup %1563 }
 0xb3c   :  { %v1026_v24 = vmul.f32 %v1564_v23, %v1562_v22  ;;  %v1566_v43 = vpop.eup %1565  ;;  %v1025_v44 = vmul.f32 %v1564_v23, %v928_v8 }
 0xb3d   :  { %v1022_v25 = vadd.f32 1.0, %v1566_v43 }
 0xb3e   :  { %1028 = vrot.lane.b32.xlu0 %v1026_v24, %s1672_s4 }
 0xb3f   :  { %1567 = vrcp.f32 %v1022_v25 }
 0xb49   :  { %v1568_v30 = vpop.eup %1567 }
 0xbb0   :  { %v1029_v28 = vpop.permute.xlu0 %1028 }
 0xbb1   :  { %v1031_v29 = vadd.f32 %v1029_v28, %v1025_v44 }
 0xbb3   :  { %1569 = vtanh.f32 %v1031_v29 }
 0xbbd   :  { %v1570_v41 = vpop.eup %1569 }
 0xbbe   :  { %v1033_v31 = vmul.f32 %v1570_v41, %v1568_v30 }
 0xbc0   :  { %1038 = vrot.lane.b32.xlu1 %v1033_v31, %s1672_s4 }
 0xc32   :  { %v1039_v5 = vpop.permute.xlu1 %1038 }
 0xc33   :  { %1294 = vmatmul.mubr.msk.f32.vlgmr.msra.gmra.mrb[8].mxu0 %vm420_vm0, %v1039_v5 }
 0xc34   :  { %1447 = vmatpush1.bf16.msra.mxu0 %v1769_v53  ;;  %1209 = vmatprep.mubr.f32.mxu0 %v1671_v1  ;;  %v378_v53 = vadd.f32 %v1879_v46, %v1893_v57 }
 0xc35   :  { %1449 = vmatprep.subr.bf16.mxu0 %v1771_v54 }
 0xc38   :  { %1451 = vmatpush1.bf16.msra.mxu0 %v1779_v11 }
 0xc39   :  { %1453 = vmatprep.subr.bf16.mxu0 %v1781_v12 }
 0xc3c   :  { %1455 = vmatpush1.bf16.msra.mxu0 %v1788_v26 }
 0xc3d   :  { %1457 = vmatprep.subr.bf16.mxu0 %v1790_v27 }
 0xc40   :  { %1459 = vmatpush1.bf16.msra.mxu0 %v1796_v37 }
 0xd06   :  { %v1108_v33 = vpop.f32.mrb[8].mxu0 }
 0xd07   :  { %v1113_v1 = vadd.f32 %v1108_v33, %v376_v32  ;;  %v1110_v2 = vpop.f32.mrb[9].mxu0 }
 0xd08   :  { %v1114_v54 = vadd.f32 %v1110_v2, %v378_v53 }
 0xd09   :  { %v1295_v34 = vmul.f32 -1.442695, %v1113_v1 }
 0xd0a   :  { %v1296_v37 = vmul.f32 -1.442695, %v1114_v54 }
 0xd0b   :  { %1571 = vpow2.f32 %v1295_v34 }
 0xd0c   :  { %1573 = vtanh.f32 %v1114_v54 }
 0xd15   :  { %v1572_v11 = vpop.eup %1571 }
 0xd16   :  { %v1118_v12 = vadd.f32 1.0, %v1572_v11  ;;  %v1574_v26 = vpop.eup %1573 }
 0xd18   :  { %1575 = vrcp.f32 %v1118_v12 }
 0xd19   :  { %1577 = vpow2.f32 %v1296_v37 }
 0xd22   :  { %v1576_v27 = vpop.eup %1575 }
 0xd23   :  { %v1129_v35 = vmul.f32 %v1576_v27, %v1574_v26  ;;  %v1578_v45 = vpop.eup %1577  ;;  %v1128_v46 = vmul.f32 %v1576_v27, %v1031_v29 }
 0xd24   :  { %v1125_v36 = vadd.f32 1.0, %v1578_v45 }
 0xd25   :  { %1131 = vrot.lane.b32.xlu0 %v1129_v35, %s1672_s4 }
 0xd26   :  { %1579 = vrcp.f32 %v1125_v36 }
 0xd30   :  { %v1580_v51 = vpop.eup %1579 }
 0xd97   :  { %v1132_v38 = vpop.permute.xlu0 %1131 }
 0xd98   :  { %v1134_v48 = vadd.f32 %v1132_v38, %v1128_v46 }
 0xd9a   :  { %1581 = vtanh.f32 %v1134_v48 }
 0xda4   :  { %v1582_v52 = vpop.eup %1581 }
 0xda5   :  { %v1136_v55 = vmul.f32 %v1582_v52, %v1580_v51 }
 0xda7   :  { %1141 = vrot.lane.b32.xlu1 %v1136_v55, %s1672_s4 }
 0xe19   :  { %v1142_v56 = vpop.permute.xlu1 %1141 }
 0xe1a   :  { %1297 = vmatmul.mubr.msk.f32.vlgmr.msra.gmra.mrb[10].mxu0 %vm420_vm0, %v1142_v56 }
 0xeed   :  { %v1211_v60 = vpop.f32.mrb[10].mxu0 }
 0xeee   :  { %v1216_v61 = vadd.f32 %v1211_v60, %v382_v58  ;;  %v1213_v62 = vpop.f32.mrb[11].mxu0 }
 0xeef   :  { %v1217_v63 = vadd.f32 %v1213_v62, %v384_v59 }
 0xef0   :  { %v1298_v3 = vmul.f32 -1.442695, %v1216_v61 }
 0xef1   :  { %v1299_v40 = vmul.f32 -1.442695, %v1217_v63 }
 0xef2   :  { %1583 = vpow2.f32 %v1298_v3 }
 0xef3   :  { %1585 = vtanh.f32 %v1217_v63 }
 0xefc   :  { %v1584_v6 = vpop.eup %1583 }
 0xefd   :  { %v1221_v7 = vadd.f32 1.0, %v1584_v6  ;;  %v1586_v42 = vpop.eup %1585 }
 0xeff   :  { %1587 = vrcp.f32 %v1221_v7 }
 0xf00   :  { %1589 = vpow2.f32 %v1299_v40 }
 0xf09   :  { %v1588_v39 = vpop.eup %1587 }
 0xf0a   :  { %v1232_v8 = vmul.f32 %v1588_v39, %v1586_v42  ;;  %v1590_v49 = vpop.eup %1589  ;;  %v1231_v50 = vmul.f32 %v1588_v39, %v1134_v48 }
 0xf0b   :  { %v1228_v0 = vadd.f32 1.0, %v1590_v49 }
 0xf0c   :  { %1234 = vrot.lane.b32.xlu0 %v1232_v8, %s1672_s4 }
 0xf0d   :  { %1591 = vrcp.f32 %v1228_v0 }
 0xf17   :  { %v1592_v10 = vpop.eup %1591 }
 0xf7e   :  { %v1235_v57 = vpop.permute.xlu0 %1234 }
 0xf7f   :  { %v1237_v9 = vadd.f32 %v1235_v57, %v1231_v50 }
 0xf81   :  { %1593 = vtanh.f32 %v1237_v9 }
 0xf8b   :  { %v1594_v4 = vpop.eup %1593 }
 0xf8c   :  { %v1239_v13 = vmul.f32 %v1594_v4, %v1592_v10 }
 0xf8e   :  { %1241 = vrot.lane.b32.xlu1 %v1239_v13, %s1672_s4 }
0x1000   :  { %v1242_v14 = vpop.permute.xlu1 %1241 }
0x1001   :  { %1244 = vst.msk [vmem:[#allocation8] sm:$0xff] %vm420_vm0, %v1242_v14 }
0x1002   :  { %1650 = shalt.err (!%p1647_p6)
}
0x1003   :  { %s1651_s26 = scalar_lea.hbm %s2007_s5, 128 }
0x1004   :  { %p1652_p7 = scmp.ne.s32.totalorder %s2007_s5, %s1651_s26  ;;  %p1655_p8 = scmp.lt.u32.totalorder %s1651_s26, %s2007_s5 }
0x1006   :  { %p1657_p9 = pnand %p1655_p8, %p1652_p7 }
0x1008   :  { %1660 = shalt.err (!%p1657_p9)
}
0x1009   :  { %1254 = dma.vmem_to_hbm [thread:$0]  %s1252_s22, 128, %s2007_s5, [#allocation5]  }
0x100a   :  { %1665 = dma.done.wait [#allocation5], 128  }
0x100b   :  { %1666 = vsyncadd [#allocation5], 4294967168 }
0x100c   :  { %1258 = vsyncpa [#allocation4], 1 }
0x100d   :  { %1259 = vsyncpa [#allocation7], 1 }
0x100e   :  { %1260 = vsyncpa [#allocation5], 1 }

</bundles_post_ra>
